<compile_context>
chip_gen: v7x
topology: tpu7x:2x2x1
jax: 0.10.0
libtpu: 0.0.40
codegen_flags: <defaults>
</compile_context>

<pallas_src>
import math

import jax
import jax.numpy as jnp
from jax.experimental import pallas as pl
from jax.experimental.pallas import tpu as pltpu


def _drop_path_kernel(scale_ref, x_ref, o_ref):
    # scale_ref: SMEM (B,) f32, per-sample scale = keep_mask / keep_prob
    # x_ref / o_ref: VMEM (1, TR, LANE) tile of sample b (native dtype)
    b = pl.program_id(0)
    x = x_ref[...].astype(jnp.float32)          # in-vreg upconvert (free vs HBM BW)
    o_ref[...] = (x * scale_ref[b]).astype(o_ref.dtype)


def _row_tile(rows, lane, itemsize, target_bytes=1 << 20):
    """Pick a row-tile: ~1 MiB per buffer, multiple of 8, or the full extent."""
    tr = max(8, ((target_bytes // (lane * itemsize)) // 8) * 8)
    if tr >= rows:
        return rows                               # full dim -> exempt from (8,128) rule
    return tr


def _drop_path_pallas(x3, scale, tr):
    """x3: (B, R, LANE) native dtype, scale: (B,) f32, tr: row tile."""
    B, R, L = x3.shape
    grid = (B, pl.cdiv(R, tr))
    return pl.pallas_call(
        _drop_path_kernel,
        out_shape=jax.ShapeDtypeStruct((B, R, L), x3.dtype),
        grid=grid,
        in_specs=[
            pl.BlockSpec(memory_space=pltpu.SMEM),                  # scale, whole array
            pl.BlockSpec((1, tr, L), lambda b, r: (b, r, 0)),       # sample b, row tile r
        ],
        out_specs=pl.BlockSpec((1, tr, L), lambda b, r: (b, r, 0)),
        compiler_params=pltpu.CompilerParams(
            dimension_semantics=("parallel", "parallel")),
    )(scale, x3)


def dinat_drop_path(hidden_states, drop_prob=0.0, training=False, *, key=None):
    """Matches transformers' drop_path semantics.

    output = input / keep_prob * floor(keep_prob + U[0,1))   (per-sample mask)
    """
    if drop_prob == 0.0 or not training:
        return hidden_states

    assert key is not None, "need a PRNG key in training mode"
    keep_prob = 1.0 - drop_prob
    B = hidden_states.shape[0]
    orig_shape = hidden_states.shape
    n = math.prod(orig_shape[1:])

    # Per-sample binary keep mask in f32 (only (B,) scalars; finer-grained than
    # doing floor(keep_prob + rand) in bf16, same semantics otherwise).
    rand = jax.random.uniform(key, (B,), dtype=jnp.float32)
    scale = jnp.floor(keep_prob + rand) / keep_prob          # (B,) f32

    itemsize = jnp.dtype(hidden_states.dtype).itemsize

    # Choose the widest lane-dense layout that divides n (free reshape, data
    # is contiguous) -> fewer store rows / DMA descriptors per tile.
    lane = next((l for l in (1024, 512, 256, 128) if n % l == 0), None)

    if lane is None:
        # Rare ragged case: pad only the trailing <128 elements to one lane row.
        lane = 128
        n_pad = ((n + lane - 1) // lane) * lane
        rows = n_pad // lane
        x3 = jnp.pad(hidden_states.reshape(B, n), ((0, 0), (0, n_pad - n)))
        x3 = x3.reshape(B, rows, lane)
        out = _drop_path_pallas(x3, scale, _row_tile(rows, lane, itemsize))
        return out.reshape(B, n_pad)[:, :n].reshape(orig_shape)

    rows = n // lane
    x3 = hidden_states.reshape(B, rows, lane)                # no copy, no dtype cast
    out = _drop_path_pallas(x3, scale, _row_tile(rows, lane, itemsize))
    return out.reshape(orig_shape)


if __name__ == "__main__":
    key = jax.random.PRNGKey(0)
    k_x, k_mask = jax.random.split(key)

    drop_prob = 0.1
    keep_prob = 1.0 - drop_prob

    # ---- main case: DiNAT-like NHWC hidden state, f32 ----
    B, H, W, C = 2, 16, 16, 32
    x = jax.random.normal(k_x, (B, H, W, C), dtype=jnp.float32)

    y_train = dinat_drop_path(x, drop_prob=drop_prob, training=True, key=k_mask)
    y_train = jax.block_until_ready(y_train)

    # Pure-JAX reference with the same mask.
    rand = jax.random.uniform(k_mask, (B,), dtype=jnp.float32)
    mask = jnp.floor(keep_prob + rand).reshape(B, 1, 1, 1)
    y_ref = x / keep_prob * mask
    assert jnp.allclose(y_train, y_ref, atol=1e-6), "train-mode mismatch (f32)"

    # ---- bf16 path: no up-cast outside the kernel, f32 compute in-register ----
    x_bf16 = x.astype(jnp.bfloat16)
    y_bf16 = dinat_drop_path(x_bf16, drop_prob=drop_prob, training=True, key=k_mask)
    y_bf16 = jax.block_until_ready(y_bf16)
    y_bf16_ref = (x_bf16.astype(jnp.float32) / keep_prob * mask).astype(jnp.bfloat16)
    assert jnp.allclose(y_bf16.astype(jnp.float32),
                        y_bf16_ref.astype(jnp.float32), atol=1e-2), "bf16 mismatch"

    # ---- ragged fallback: per-sample size not divisible by 128 ----
    x_rag = jax.random.normal(k_x, (2, 3, 5, 7), dtype=jnp.float32)   # n = 105
    y_rag = dinat_drop_path(x_rag, drop_prob=drop_prob, training=True, key=k_mask)
    y_rag = jax.block_until_ready(y_rag)
    mask_r = jnp.floor(keep_prob + rand).reshape(2, 1, 1, 1)
    y_rag_ref = x_rag / keep_prob * mask_r
    assert jnp.allclose(y_rag, y_rag_ref, atol=1e-6), "ragged-path mismatch"

    # ---- eval mode / drop_prob == 0: identity ----
    y_eval = dinat_drop_path(x, drop_prob=drop_prob, training=False)
    y_eval = jax.block_until_ready(y_eval)
    assert jnp.array_equal(y_eval, x), "eval-mode should be identity"

    print("KERNEL_OK")
</pallas_src>

<mosaic_0001>
module attributes {stable_mosaic.version = 11 : i64} {
  func.func @_drop_path_kernel(%arg0: i32, %arg1: i32, %arg2: memref<2xf32, #tpu.memory_space<smem>>, %arg3: memref<1x8x1024xf32, #tpu.memory_space<vmem>>, %arg4: memref<1x8x1024xf32, #tpu.memory_space<vmem>>) attributes {dimension_semantics = [#tpu.dimension_semantics<parallel>, #tpu.dimension_semantics<parallel>], iteration_bounds = array<i64: 2, 1>, scalar_prefetch = 0 : i64, scratch_operands = 0 : i64, tpu.core_type = #tpu.core_type<tc>, window_params = [{transform_indices = @transform_0, window_bounds = array<i64: 2>}, {transform_indices = @transform_1, window_bounds = array<i64: 1, 8, 1024>}, {transform_indices = @transform_2, window_bounds = array<i64: 1, 8, 1024>}]} {
    %c0 = arith.constant 0 : index
    %c0_0 = arith.constant 0 : index
    %c0_1 = arith.constant 0 : index
    %0 = vector.load %arg3[%c0, %c0_0, %c0_1] : memref<1x8x1024xf32, #tpu.memory_space<vmem>>, vector<1x8x1024xf32>
    %1 = arith.index_cast %arg0 : i32 to index
    %2 = memref.load %arg2[%1] : memref<2xf32, #tpu.memory_space<smem>>
    %3 = vector.broadcast %2 : f32 to vector<1x8x1024xf32>
    %4 = arith.mulf %0, %3 : vector<1x8x1024xf32>
    %c0_2 = arith.constant 0 : index
    %c0_3 = arith.constant 0 : index
    %c0_4 = arith.constant 0 : index
    %5 = vector.load %arg4[%c0_2, %c0_3, %c0_4] : memref<1x8x1024xf32, #tpu.memory_space<vmem>>, vector<1x8x1024xf32>
    tpu.vector_store %arg4[%c0_2, %c0_3, %c0_4], %4 {strides = array<i32>} : memref<1x8x1024xf32, #tpu.memory_space<vmem>>, vector<1x8x1024xf32>,
    return
  }
  func.func @transform_0(%arg0: i32, %arg1: i32) -> i32 {
    %c0_i32 = arith.constant 0 : i32
    %c0_i32_0 = arith.constant 0 : i32
    return %c0_i32 : i32
  }
  func.func @transform_1(%arg0: i32, %arg1: i32) -> (i32, i32, i32) {
    %c0_i32 = arith.constant 0 : i32
    %c0_i32_0 = arith.constant 0 : i32
    return %arg0, %arg1, %c0_i32 : i32, i32, i32
  }
  func.func @transform_2(%arg0: i32, %arg1: i32) -> (i32, i32, i32) {
    %c0_i32 = arith.constant 0 : i32
    %c0_i32_0 = arith.constant 0 : i32
    return %arg0, %arg1, %c0_i32 : i32, i32, i32
  }
}

</mosaic_0001>

<bundles_post_ra>
// kernel: tpu_custom_call.1
= control target key start
LH: loop header
LB: loop body
LE: loop exit
PB: predicated region body
PF: predicated region fallthrough
CT: control target
= control target key end

     0   :  { %7 = vsyncpa [#allocation5], 0  ;;  %s797_s0 = inlined_call_operand.hbm [shape: f32[2], index: 0, kind: input, shape index: {}]   ;;  %s798_s1 = inlined_call_operand.hbm [shape: f32[2,8,1024], index: 1, kind: input, shape index: {}]   ;;  %s799_s2 = inlined_call_operand.hbm [shape: f32[2,8,1024], index: 2, kind: output, shape index: {}]  }
   0x1   :  { %8 = vsyncpa [#allocation3], 0 }
   0x2   :  { %10 = vsyncpa [#allocation3 + $0x1], 0 }
   0x3   :  { %11 = vsyncpa [#allocation4], 0 }
   0x4   :  { %13 = vsyncpa [#allocation4 + $0x1], 0  ;;  %s570_s9 = smov 0   ;;  %s572_s10 = smov 0  }
   0x5   :  { %s574_s11 = smov 0   ;;  %s576_s12 = smov 0  }
   0x6   :  { %s578_s13 = smov 0   ;;  %s580_s14 = smov 0  }
   0x7 LB: > { %s329_s15 = sadd.s32 4294967295, %s550_s14   ;;  %s330_s16 = sadd.s32 4294967294, %s550_s14   ;;  %s550_s14 = sphi %s580_s14, %s19_s14   ;;  %s546_s13 = sphi %s578_s13, %s823_s13   ;;  %s542_s12 = sphi %s576_s12, %s822_s12   ;;  %s538_s11 = sphi %s574_s11, %s821_s11   ;;  %s534_s10 = sphi %s572_s10, %s820_s10   ;;  %s530_s9 = sphi %s570_s9, %s819_s9  }
   0x8   : > { %p74_p0 = scmp.ne.s32.totalorder %s534_s10, %s530_s9  ;;  %p604_p1 = scmp.eq.s32.totalorder %s329_s15, 0 }
   0x9   : > { %p608_p2 = scmp.eq.s32.totalorder %s329_s15, 1  ;;  %p106_p3 = scmp.eq.s32.totalorder %s330_s16, 1 }
   0xa   : > { %s804_s17 = scalar_select %p604_p1, 1, 0 }
   0xb   : > { %p614_p4 = por %p604_p1, %p74_p0  ;;  %p331_p5 = scmp.ge.s32.totalorder %s550_s14, 1 }
   0xc   : > { %p619_p6 = por %p106_p3, %p74_p0  ;;  %p113_p7 = scmp.lt.s32.totalorder %s550_s14, 3 }
   0xd   : > { %s806_s19 = scalar_select %p614_p4, 1, 0 }
   0xe   : > { %s807_s20 = scalar_select %p619_p6, 1, 0 }
   0xf   : > { %p624_p8 = pnand %p331_p5, %p113_p7  ;;  %s31_s22 = sadd.s32 1, %s546_s13 }
  0x10   : > { %p638_p12 = scmp.ge.s32.totalorder %s31_s22, 2  ;;  %s61_s25 = sadd.s32 1, %s538_s11 }
  0x11   : > { %p356_p10 = pneg %p624_p8  ;;  %p68_p13 = scmp.ne.s32.totalorder %s538_s11, %s534_s10 }
  0x12   : > { %p69_p0 = scmp.eq.s32.totalorder %s550_s14, 0  ;;  %s421_s28 = scalar_lea.hbm %s797_s0, 16 }
  0x13   : > { %p634_p11 = pnand %p356_p10, %p604_p1  ;;  %p422_p3 = scmp.ne.s32.totalorder %s797_s0, %s421_s28 }
  0x14   : > { %p428_p9 = scmp.lt.u32.totalorder %s421_s28, %s797_s0 }
  0x15   : > { %p423_p5 = pneg %p634_p11 }
  0x17   : > { %p424_p7 = pnand %p423_p5, %p422_p3 }
  0x19   : > { %p425_p10 = pneg %p424_p7 }
  0x1b   : > { %p430_p6 = pnand %p428_p9, %p425_p10 }
  0x1d   : > { %433 = shalt.err (!%p430_p6)
}
  0x1e   : > { %s552_s5 = smov [#allocation2]   ;;  %s825_s22 = smov (%p638_p12, %s31_s22), 0 }
  0x1f   : > { %359 = dma.hbm_to_smem (!%p634_p11), %s797_s0, 16, %s552_s5, [#allocation5]  }
  0x20   : > { %p669_p6 = por %p69_p0, %p68_p13  ;;  %p678_p9 = por %p608_p2, %p68_p13 }
  0x21   : > { %s56_s16 = ssub.s32 %s546_s13, %s825_s22  ;;  %p369_p3 = scmp.lt.s32.totalorder %s550_s14, 2 }
  0x22   : > { %s812_s15 = scalar_select %p678_p9, 1, 0 }
  0x23   : > { %p59_p5 = scmp.eq.s32.totalorder %s56_s16, 0  ;;  %s135_s23 = sand.u32 1, %s538_s11  }
  0x24   : > { %s334_s24 = sshll.u32 %s135_s23, 6  ;;  %s346_s27 = sshll.u32 %s546_s13, 10 }
  0x25   : > { %s687_s26 = scalar_select %p59_p5, %s538_s11, %s61_s25  }
  0x26   : > { %s693_s30 = scalar_lea.hbm %s798_s1, %s346_s27  ;;  %s139_s18 = scalar_lea.vmem [#allocation6], %s334_s24 }
  0x27   : > { %s149_s3 = sshll.u32 %s139_s18, 4  ;;  %p699_p2 = pnand %p369_p3, %p669_p6  ;;  %s695_s3 = int_to_ptr.vmem [resolvable:$true] %s149_s3 }
  0x28   : > { %s136_s25 = scalar_lea.sflag [#allocation3], %s135_s23  ;;  %s434_s5 = scalar_lea.hbm %s693_s30, 1024 }
  0x29   : > { %p435_p11 = scmp.ne.s32.totalorder %s693_s30, %s434_s5  ;;  %p436_p12 = pneg %p699_p2 }
  0x2a   : > { %s439_s16 = scalar_lea.hbm %s798_s1, 2048  ;;  %p440_p7 = scmp.lt.u32.totalorder %s693_s30, %s798_s1 }
  0x2b   : > { %p437_p13 = pnand %p436_p12, %p435_p11  ;;  %p441_p10 = scmp.lt.u32.totalorder %s439_s16, %s434_s5 }
  0x2c   : > { %p443_p3 = scmp.lt.u32.totalorder %s434_s5, %s693_s30 }
  0x2d   : > { %p438_p0 = pneg %p437_p13  ;;  %p442_p6 = por %p441_p10, %p440_p7 }
  0x2f   : > { %p444_p5 = por %p443_p3, %p442_p6 }
  0x31   : > { %p445_p9 = pnand %p444_p5, %p438_p0 }
  0x33   : > { %448 = shalt.err (!%p445_p9)
}
  0x34   : > { %s449_s23 = scalar_lea.vmem %s695_s3, 1024  ;;  %s553_s27 = smov [#allocation6]  }
  0x35   : > { %p450_p11 = scmp.ne.s32.totalorder %s695_s3, %s449_s23  ;;  %s454_s28 = sshll.u32 %s553_s27, 4  ;;  %s455_s28 = int_to_ptr.vmem [resolvable:$false] %s454_s28 }
  0x36   : > { %s456_s29 = scalar_lea.vmem %s455_s28, 2048  ;;  %p457_p1 = scmp.lt.s32.totalorder %s695_s3, %s455_s28 }
  0x37   : > { %p452_p13 = pnand %p450_p11, %p436_p12  ;;  %p458_p7 = scmp.lt.s32.totalorder %s456_s29, %s449_s23 }
  0x39   : > { %p453_p4 = pneg %p452_p13  ;;  %p459_p10 = por %p458_p7, %p457_p1 }
  0x3b   : > { %p460_p6 = pnand %p459_p10, %p453_p4 }
  0x3d   : > { %463 = shalt.err (!%p460_p6)
}
  0x3e   : > { %363 = dma.hbm_to_vmem [thread:$0]  (!%p699_p2), %s693_s30, 1024, %s695_s3, %s136_s25  }
  0x3f   : > { %158 = sbr.rel (%p624_p8) target bundleno = 103 (0x67), region = 28  ;;  %p814_p9 = scmp.ne.s32.totalorder (!%p624_p8), %s804_s17, 0 }
  0x46   : > { %517 = dma.done.wait (%p814_p9), [#allocation5], 16  }
  0x47   : > { %519 = vsyncadd (%p814_p9), [#allocation5], 4294967280  ;;  %s735_s18 = sand.u32 1, %s534_s10   ;;  %p815_p1 = scmp.ne.s32.totalorder %s806_s19, 0 }
  0x48   : > { %s339_s5 = sshll.u32 %s735_s18, 6  ;;  %s165_s4 = scalar_lea.sflag [#allocation3], %s735_s18 }
  0x49   : > { %s168_s6 = scalar_lea.vmem [#allocation6], %s339_s5 }
  0x4a   : > { %521 = dma.done.wait (%p815_p1), %s165_s4, 1024  }
  0x4b   : > { %523 = vsyncadd (%p815_p1), %s165_s4, 4294966272 }
  0x4c   : > { %173 = sfence }
  0x4d   : > { %s198_s21 = sld [smem:[#allocation2 + %s542_s12]]  ;;  %v190_v0 = vld [vmem:[%s168_s6] sm:$0xff]  ;;  %v191_v1 = vld [vmem:[%s168_s6 + $0x8] sm:$0xff]  ;;  %v192_v2 = vld [vmem:[%s168_s6 + $0x10] sm:$0xff]  ;;  %s347_s17 = sshll.u32 %s542_s12, 10 }
  0x4e   : > { %v193_v3 = vld [vmem:[%s168_s6 + $0x18] sm:$0xff]  ;;  %v194_v4 = vld [vmem:[%s168_s6 + $0x20] sm:$0xff]  ;;  %v195_v5 = vld [vmem:[%s168_s6 + $0x28] sm:$0xff]  ;;  %s189_s30 = scalar_lea.vmem [#allocation7], %s339_s5  ;;  %s748_s7 = scalar_lea.hbm %s799_s2, %s347_s17 }
  0x4f   : > { %v196_v6 = vld [vmem:[%s168_s6 + $0x30] sm:$0xff]  ;;  %v197_v7 = vld [vmem:[%s168_s6 + $0x38] sm:$0xff]  ;;  %s233_s3 = sshll.u32 %s189_s30, 4  ;;  %s217_s12 = scalar_lea.sflag [#allocation4], %s735_s18  ;;  %s750_s3 = int_to_ptr.vmem [resolvable:$true] %s233_s3 }
  0x50   : > { %s464_s16 = scalar_lea.vmem %s750_s3, 1024  ;;  %p816_p8 = scmp.ne.s32.totalorder %s812_s15, 0 }
  0x51   : > { %p465_p4 = scmp.ne.s32.totalorder %s750_s3, %s464_s16  ;;  %s554_s8 = smov [#allocation7]  }
  0x52   : > { %s468_s24 = sshll.u32 %s554_s8, 4  ;;  %s469_s24 = int_to_ptr.vmem [resolvable:$false] %s468_s24 }
  0x53   : > { %v199_v8 = vstv %s198_s21  ;;  %p466_p2 = pnand %p465_p4, %p816_p8  ;;  %s470_s23 = scalar_lea.vmem %s469_s24, 2048 }
  0x54   : > { %v200_v9 = vmul.f32 %v199_v8, %v190_v0  ;;  %v201_v10 = vmul.f32 %v199_v8, %v191_v1  ;;  %v202_v11 = vmul.f32 %v199_v8, %v192_v2  ;;  %v203_v12 = vmul.f32 %v199_v8, %v193_v3  ;;  %p471_p0 = scmp.lt.s32.totalorder %s750_s3, %s469_s24  ;;  %p472_p3 = scmp.lt.s32.totalorder %s470_s23, %s464_s16 }
  0x55   : > { %v204_v13 = vmul.f32 %v199_v8, %v194_v4  ;;  %v205_v14 = vmul.f32 %v199_v8, %v195_v5  ;;  %v206_v15 = vmul.f32 %v199_v8, %v196_v6  ;;  %v207_v16 = vmul.f32 %v199_v8, %v197_v7  ;;  %p467_p12 = pneg %p466_p2 }
  0x56   : > { %208 = vst [vmem:[%s189_s30] sm:$0xff] %v200_v9  ;;  %209 = vst [vmem:[%s189_s30 + $0x8] sm:$0xff] %v201_v10  ;;  %p473_p5 = por %p472_p3, %p471_p0 }
  0x57   : > { %210 = vst [vmem:[%s189_s30 + $0x10] sm:$0xff] %v202_v11  ;;  %211 = vst [vmem:[%s189_s30 + $0x18] sm:$0xff] %v203_v12 }
  0x58   : > { %212 = vst [vmem:[%s189_s30 + $0x20] sm:$0xff] %v204_v13  ;;  %213 = vst [vmem:[%s189_s30 + $0x28] sm:$0xff] %v205_v14  ;;  %p474_p11 = pnand %p473_p5, %p467_p12 }
  0x59   : > { %214 = vst [vmem:[%s189_s30 + $0x30] sm:$0xff] %v206_v15  ;;  %215 = vst [vmem:[%s189_s30 + $0x38] sm:$0xff] %v207_v16 }
  0x5a   : > { %477 = shalt.err (!%p474_p11)
}
  0x5b   : > { %s478_s27 = scalar_lea.hbm %s748_s7, 1024  ;;  %s482_s18 = scalar_lea.hbm %s799_s2, 2048 }
  0x5c   : > { %p479_p13 = scmp.ne.s32.totalorder %s748_s7, %s478_s27  ;;  %p483_p6 = scmp.lt.u32.totalorder %s748_s7, %s799_s2 }
  0x5d   : > { %p484_p9 = scmp.lt.u32.totalorder %s482_s18, %s478_s27  ;;  %p486_p4 = scmp.lt.u32.totalorder %s478_s27, %s748_s7 }
  0x5e   : > { %p480_p7 = pnand %p479_p13, %p816_p8 }
  0x5f   : > { %p485_p1 = por %p484_p9, %p483_p6 }
  0x60   : > { %p481_p10 = pneg %p480_p7 }
  0x61   : > { %p487_p2 = por %p486_p4, %p485_p1 }
  0x63   : > { %p488_p12 = pnand %p487_p2, %p481_p10 }
  0x65   : > { %491 = shalt.err (!%p488_p12)
}
  0x66   : > { %354 = dma.vmem_to_hbm [thread:$0]  (%p816_p8), %s750_s3, 1024, %s748_s7, %s217_s12  }
  0x67 PF: > { %s245_s6 = sand.u32 1, %s530_s9   ;;  %p817_p0 = scmp.ne.s32.totalorder %s807_s20, 0 }
  0x68   : > { %p818_p3 = scmp.ge.s32.totalorder %s550_s14, 2  ;;  %s246_s21 = scalar_lea.sflag [#allocation4], %s245_s6 }
  0x6a   : > { %p365_p5 = pnand %p818_p3, %p817_p0 }
  0x6c   : > { %525 = dma.done.wait (!%p365_p5), %s246_s21, 1024  }
  0x6d   : > { %527 = vsyncadd (!%p365_p5), %s246_s21, 4294966272  ;;  %s19_s14 = sadd.s32 1, %s550_s14   ;;  %s819_s9 = smov %s534_s10 }
  0x6e   : > { %p16_p11 = scmp.ge.s32.totalorder %s19_s14, 4   ;;  %s820_s10 = smov %s538_s11 }
  0x6f   : > { %s821_s11 = smov %s687_s26  ;;  %s822_s12 = smov %s546_s13 }
  0x70   : > { %s823_s13 = smov %s825_s22  ;;  %18 = sbr.rel (!%p16_p11) target bundleno = 7 (0x7), region = 78 }
  0x77   :  { %251 = vsyncpa [#allocation3], 1 }
  0x78   :  { %253 = vsyncpa [#allocation3 + $0x1], 1 }
  0x79   :  { %254 = vsyncpa [#allocation4], 1 }
  0x7a   :  { %256 = vsyncpa [#allocation4 + $0x1], 1 }
  0x7b   :  { %257 = vsyncpa [#allocation5], 1 }
  0x7c   :  { %259 = vsyncpa [#allocation5 + $0x1], 1 }

</bundles_post_ra>
